<compile_context>
chip_gen: v7x
topology: tpu7x:2x2x1
jax: 0.10.0
libtpu: 0.0.40
codegen_flags: <defaults>
</compile_context>

<pallas_src>
import jax
import jax.numpy as jnp
from jax.experimental import pallas as pl
from jax.experimental.pallas import tpu as pltpu


def _round_up(a, b):
    return (a + b - 1) // b * b


def _gelu(x):
    # tanh-approx GELU in f32 (tanh lands on the EUP slot, ~free vs the MXU).
    c = 0.7978845608028654  # sqrt(2/pi)
    return 0.5 * x * (1.0 + jnp.tanh(c * (x + 0.044715 * x * x * x)))


def residual_add_ffn(x, w1, b1, w2, b2, *, tm=256, hff_chunk=512,
                     single_buffer_weights=True):
    """x: (N, H). Returns GELU(x@W1+b1)@W2 + b2 + x, fused in one Pallas kernel."""
    N, H = x.shape
    Hff = w1.shape[1]

    # Lane-dense padding (last dims -> multiples of 128); zero pads are inert:
    # padded Hff columns give gelu(0)=0, padded H lanes give 0 and are sliced off.
    Hp = _round_up(H, 128)
    Hffp = _round_up(Hff, 128)

    # Row tile: big enough to fill MXU rows, clamped for tiny inputs, sublane
    # aligned. Pad N up to a multiple of tm_eff (masked-free full tiles).
    tm_eff = min(tm, _round_up(N, 8))
    Np = _round_up(N, tm_eff)

    xp = jnp.pad(x, ((0, Np - N), (0, Hp - H)))
    w1p = jnp.pad(w1, ((0, Hp - H), (0, Hffp - Hff)))
    b1p = jnp.pad(b1, ((0, 0), (0, Hffp - Hff)))
    w2p = jnp.pad(w2, ((0, Hffp - Hff), (0, Hp - H)))
    b2p = jnp.pad(b2, ((0, 0), (0, Hp - H)))

    # Static Hff chunking: caps the (tm, chunk) f32 GELU intermediate.
    chunk = min(hff_chunk, Hffp)
    nchunks = -(-Hffp // chunk)

    def kernel(x_ref, w1_ref, b1_ref, w2_ref, b2_ref, o_ref):
        x_blk = x_ref[...]                        # native dtype -> MXU input
        xf = x_blk.astype(jnp.float32)            # f32 residual
        b1v = b1_ref[...].astype(jnp.float32)     # biases read ONCE (hoisted)
        acc = xf + b2_ref[...].astype(jnp.float32)
        for c in range(nchunks):                  # static trip count
            lo = c * chunk
            hi = min(Hffp, lo + chunk)
            h = jnp.dot(x_blk, w1_ref[:, lo:hi],
                        preferred_element_type=jnp.float32)
            h = _gelu(h + b1v[:, lo:hi])
            acc = acc + jnp.dot(h.astype(w2_ref.dtype), w2_ref[lo:hi, :],
                                preferred_element_type=jnp.float32)
        o_ref[...] = acc.astype(o_ref.dtype)

    # VMEM budget: weights (+ biases) x buffer count, double-buffered x/out
    # tiles, plus f32 live intermediates. Floor 32 MiB, cap 64 MiB (v7x).
    w_itemsize = jnp.dtype(w1.dtype).itemsize
    x_itemsize = jnp.dtype(x.dtype).itemsize
    nbuf_w = 1 if single_buffer_weights else 2
    w_bytes = (2 * Hp * Hffp + Hffp + Hp) * w_itemsize
    io_bytes = 2 * (2 * tm_eff * Hp * x_itemsize)
    live_bytes = tm_eff * (chunk + 2 * Hp) * 4
    est = nbuf_w * w_bytes + io_bytes + live_bytes
    vmem_limit = min(64 * 1024 * 1024, max(32 * 1024 * 1024, int(1.5 * est)))

    def build(single_buf):
        wkw = {"pipeline_mode": pl.Buffered(1)} if single_buf else {}
        return pl.pallas_call(
            kernel,
            out_shape=jax.ShapeDtypeStruct((Np, Hp), x.dtype),
            grid_spec=pltpu.PrefetchScalarGridSpec(
                num_scalar_prefetch=0,
                grid=(Np // tm_eff,),
                in_specs=[
                    pl.BlockSpec((tm_eff, Hp), lambda i: (i, 0)),        # x tile
                    pl.BlockSpec((Hp, Hffp), lambda i: (0, 0), **wkw),   # W1
                    pl.BlockSpec((1, Hffp), lambda i: (0, 0), **wkw),    # b1
                    pl.BlockSpec((Hffp, Hp), lambda i: (0, 0), **wkw),   # W2
                    pl.BlockSpec((1, Hp), lambda i: (0, 0), **wkw),      # b2
                ],
                out_specs=pl.BlockSpec((tm_eff, Hp), lambda i: (i, 0)),
            ),
            compiler_params=pltpu.CompilerParams(
                dimension_semantics=("parallel",),   # shards rows across v7x TCs
                vmem_limit_bytes=vmem_limit,
            ),
        )

    if single_buffer_weights:
        try:
            out = build(True)(xp, w1p, b1p, w2p, b2p)
        except Exception:
            # Fallback if this jax build rejects Buffered(1): correctness is
            # identical, weights are just double-buffered (2x weight VMEM).
            out = build(False)(xp, w1p, b1p, w2p, b2p)
    else:
        out = build(False)(xp, w1p, b1p, w2p, b2p)

    return out[:N, :H]


class ResidualAddPallas:
    """Mirror of the PyTorch ResidualAdd wrapper: forward(x) = fn(x) + x.
    `fn` is the fused Pallas feed-forward; the residual add happens in-kernel."""

    def __init__(self, w1, b1, w2, b2):
        self.params = (w1, b1, w2, b2)

    def __call__(self, x):
        B, S, H = x.shape
        x2d = x.reshape(B * S, H)
        out = residual_add_ffn(x2d, *self.params)
        return out.reshape(B, S, H)


def _reference(x, w1, b1, w2, b2):
    h = _gelu(x @ w1 + b1)
    return (h @ w2 + b2) + x


if __name__ == "__main__":
    key = jax.random.PRNGKey(0)

    # Small shapes consistent with the module (ragged / sub-lane -> padded path).
    B, S, H, Hff = 2, 8, 32, 64
    k_x, k_w1, k_b1, k_w2, k_b2 = jax.random.split(key, 5)
    x = jax.random.normal(k_x, (B, S, H), dtype=jnp.float32)
    w1 = 0.1 * jax.random.normal(k_w1, (H, Hff), dtype=jnp.float32)
    b1 = 0.1 * jax.random.normal(k_b1, (1, Hff), dtype=jnp.float32)
    w2 = 0.1 * jax.random.normal(k_w2, (Hff, H), dtype=jnp.float32)
    b2 = 0.1 * jax.random.normal(k_b2, (1, H), dtype=jnp.float32)

    module = ResidualAddPallas(w1, b1, w2, b2)
    out = jax.block_until_ready(module(x))
    ref = _reference(x.reshape(B * S, H), w1, b1, w2, b2).reshape(B, S, H)
    assert out.shape == x.shape and out.dtype == x.dtype
    assert jnp.allclose(out, ref, atol=1e-4, rtol=1e-4)

    # Second check: lane-dense, multi-tile path (tm=256, grid of 2).
    N2, H2, Hff2 = 512, 128, 256
    k_x, k_w1, k_b1, k_w2, k_b2 = jax.random.split(jax.random.PRNGKey(1), 5)
    x2 = jax.random.normal(k_x, (N2, H2), dtype=jnp.float32)
    w1b = 0.1 * jax.random.normal(k_w1, (H2, Hff2), dtype=jnp.float32)
    b1b = 0.1 * jax.random.normal(k_b1, (1, Hff2), dtype=jnp.float32)
    w2b = 0.1 * jax.random.normal(k_w2, (Hff2, H2), dtype=jnp.float32)
    b2b = 0.1 * jax.random.normal(k_b2, (1, H2), dtype=jnp.float32)
    out2 = jax.block_until_ready(residual_add_ffn(x2, w1b, b1b, w2b, b2b))
    ref2 = _reference(x2, w1b, b1b, w2b, b2b)
    assert jnp.allclose(out2, ref2, atol=1e-4, rtol=1e-4)

    print("KERNEL_OK")
</pallas_src>

<mosaic_0001>
module attributes {stable_mosaic.version = 11 : i64} {
  func.func @kernel(%arg0: i32, %arg1: memref<16x128xf32, #tpu.memory_space<vmem>>, %arg2: memref<128x128xf32, #tpu.memory_space<vmem>>, %arg3: memref<1x128xf32, #tpu.memory_space<vmem>>, %arg4: memref<128x128xf32, #tpu.memory_space<vmem>>, %arg5: memref<1x128xf32, #tpu.memory_space<vmem>>, %arg6: memref<16x128xf32, #tpu.memory_space<vmem>>) attributes {dimension_semantics = [#tpu.dimension_semantics<parallel>], iteration_bounds = array<i64: 1>, scalar_prefetch = 0 : i64, scratch_operands = 0 : i64, tpu.core_type = #tpu.core_type<tc>, window_params = [{transform_indices = @transform_0, window_bounds = array<i64: 16, 128>}, {pipeline_mode = #tpu.pipeline_mode<synchronous>, transform_indices = @transform_1, window_bounds = array<i64: 128, 128>}, {pipeline_mode = #tpu.pipeline_mode<synchronous>, transform_indices = @transform_2, window_bounds = array<i64: 1, 128>}, {pipeline_mode = #tpu.pipeline_mode<synchronous>, transform_indices = @transform_3, window_bounds = array<i64: 128, 128>}, {pipeline_mode = #tpu.pipeline_mode<synchronous>, transform_indices = @transform_4, window_bounds = array<i64: 1, 128>}, {transform_indices = @transform_5, window_bounds = array<i64: 16, 128>}]} {
    %c0 = arith.constant 0 : index
    %c0_0 = arith.constant 0 : index
    %0 = vector.load %arg1[%c0, %c0_0] : memref<16x128xf32, #tpu.memory_space<vmem>>, vector<16x128xf32>
    %c0_1 = arith.constant 0 : index
    %c0_2 = arith.constant 0 : index
    %1 = vector.load %arg3[%c0_1, %c0_2] : memref<1x128xf32, #tpu.memory_space<vmem>>, vector<1x128xf32>
    %c0_3 = arith.constant 0 : index
    %c0_4 = arith.constant 0 : index
    %2 = vector.load %arg5[%c0_3, %c0_4] : memref<1x128xf32, #tpu.memory_space<vmem>>, vector<1x128xf32>
    %3 = vector.broadcast %2 : vector<1x128xf32> to vector<16x128xf32>
    %4 = arith.addf %0, %3 : vector<16x128xf32>
    %c0_5 = arith.constant 0 : index
    %c0_6 = arith.constant 0 : index
    %5 = vector.load %arg2[%c0_5, %c0_6] : memref<128x128xf32, #tpu.memory_space<vmem>>, vector<128x128xf32>
    %cst = arith.constant dense<0.000000e+00> : vector<16x128xf32>
    %6 = tpu.matmul %0, %5, %cst {dimension_numbers = #tpu.dot_dimension_numbers<[1], [0], [0], [1], [0, 0, 1, 1], [], []>} : vector<16x128xf32>, vector<128x128xf32>, vector<16x128xf32> -> vector<16x128xf32>
    %7 = vector.broadcast %1 : vector<1x128xf32> to vector<16x128xf32>
    %8 = arith.addf %6, %7 : vector<16x128xf32>
    %cst_7 = arith.constant 5.000000e-01 : f32
    %9 = vector.broadcast %cst_7 : f32 to vector<16x128xf32>
    %10 = arith.mulf %9, %8 : vector<16x128xf32>
    %cst_8 = arith.constant 4.471500e-02 : f32
    %11 = vector.broadcast %cst_8 : f32 to vector<16x128xf32>
    %12 = arith.mulf %11, %8 : vector<16x128xf32>
    %13 = arith.mulf %12, %8 : vector<16x128xf32>
    %14 = arith.mulf %13, %8 : vector<16x128xf32>
    %15 = arith.addf %8, %14 : vector<16x128xf32>
    %cst_9 = arith.constant 0.797884583 : f32
    %16 = vector.broadcast %cst_9 : f32 to vector<16x128xf32>
    %17 = arith.mulf %16, %15 : vector<16x128xf32>
    %18 = math.tanh %17 : vector<16x128xf32>
    %cst_10 = arith.constant 1.000000e+00 : f32
    %19 = vector.broadcast %cst_10 : f32 to vector<16x128xf32>
    %20 = arith.addf %19, %18 : vector<16x128xf32>
    %21 = arith.mulf %10, %20 : vector<16x128xf32>
    %c0_11 = arith.constant 0 : index
    %c0_12 = arith.constant 0 : index
    %22 = vector.load %arg4[%c0_11, %c0_12] : memref<128x128xf32, #tpu.memory_space<vmem>>, vector<128x128xf32>
    %cst_13 = arith.constant dense<0.000000e+00> : vector<16x128xf32>
    %23 = tpu.matmul %21, %22, %cst_13 {dimension_numbers = #tpu.dot_dimension_numbers<[1], [0], [0], [1], [0, 0, 1, 1], [], []>} : vector<16x128xf32>, vector<128x128xf32>, vector<16x128xf32> -> vector<16x128xf32>
    %24 = arith.addf %4, %23 : vector<16x128xf32>
    %c0_14 = arith.constant 0 : index
    %c0_15 = arith.constant 0 : index
    %25 = vector.load %arg6[%c0_14, %c0_15] : memref<16x128xf32, #tpu.memory_space<vmem>>, vector<16x128xf32>
    tpu.vector_store %arg6[%c0_14, %c0_15], %24 {strides = array<i32>} : memref<16x128xf32, #tpu.memory_space<vmem>>, vector<16x128xf32>,
    return
  }
  func.func @transform_0(%arg0: i32) -> (i32, i32) {
    %c0_i32 = arith.constant 0 : i32
    %c0_i32_0 = arith.constant 0 : i32
    return %arg0, %c0_i32 : i32, i32
  }
  func.func @transform_1(%arg0: i32) -> (i32, i32) {
    %c0_i32 = arith.constant 0 : i32
    %c0_i32_0 = arith.constant 0 : i32
    %c0_i32_1 = arith.constant 0 : i32
    return %c0_i32, %c0_i32_0 : i32, i32
  }
  func.func @transform_2(%arg0: i32) -> (i32, i32) {
    %c0_i32 = arith.constant 0 : i32
    %c0_i32_0 = arith.constant 0 : i32
    %c0_i32_1 = arith.constant 0 : i32
    return %c0_i32, %c0_i32_0 : i32, i32
  }
  func.func @transform_3(%arg0: i32) -> (i32, i32) {
    %c0_i32 = arith.constant 0 : i32
    %c0_i32_0 = arith.constant 0 : i32
    %c0_i32_1 = arith.constant 0 : i32
    return %c0_i32, %c0_i32_0 : i32, i32
  }
  func.func @transform_4(%arg0: i32) -> (i32, i32) {
    %c0_i32 = arith.constant 0 : i32
    %c0_i32_0 = arith.constant 0 : i32
    %c0_i32_1 = arith.constant 0 : i32
    return %c0_i32, %c0_i32_0 : i32, i32
  }
  func.func @transform_5(%arg0: i32) -> (i32, i32) {
    %c0_i32 = arith.constant 0 : i32
    %c0_i32_0 = arith.constant 0 : i32
    return %arg0, %c0_i32 : i32, i32
  }
}

module attributes {stable_mosaic.version = 11 : i64} {
  func.func @kernel(%arg0: i32, %arg1: memref<16x128xf32, #tpu.memory_space<vmem>>, %arg2: memref<128x128xf32, #tpu.memory_space<vmem>>, %arg3: memref<1x128xf32, #tpu.memory_space<vmem>>, %arg4: memref<128x128xf32, #tpu.memory_space<vmem>>, %arg5: memref<1x128xf32, #tpu.memory_space<vmem>>, %arg6: memref<16x128xf32, #tpu.memory_space<vmem>>) attributes {dimension_semantics = [#tpu.dimension_semantics<parallel>], iteration_bounds = array<i64: 1>, scalar_prefetch = 0 : i64, scratch_operands = 0 : i64, tpu.core_type = #tpu.core_type<tc>, window_params = [{transform_indices = @transform_0, window_bounds = array<i64: 16, 128>}, {pipeline_mode = #tpu.pipeline_mode<synchronous>, transform_indices = @transform_1, window_bounds = array<i64: 128, 128>}, {pipeline_mode = #tpu.pipeline_mode<synchronous>, transform_indices = @transform_2, window_bounds = array<i64: 1, 128>}, {pipeline_mode = #tpu.pipeline_mode<synchronous>, transform_indices = @transform_3, window_bounds = array<i64: 128, 128>}, {pipeline_mode = #tpu.pipeline_mode<synchronous>, transform_indices = @transform_4, window_bounds = array<i64: 1, 128>}, {transform_indices = @transform_5, window_bounds = array<i64: 16, 128>}]} {
    %c0 = arith.constant 0 : index
    %c0_0 = arith.constant 0 : index
    %0 = vector.load %arg1[%c0, %c0_0] : memref<16x128xf32, #tpu.memory_space<vmem>>, vector<16x128xf32>
    %c0_1 = arith.constant 0 : index
    %c0_2 = arith.constant 0 : index
    %1 = vector.load %arg3[%c0_1, %c0_2] : memref<1x128xf32, #tpu.memory_space<vmem>>, vector<1x128xf32>
    %c0_3 = arith.constant 0 : index
    %c0_4 = arith.constant 0 : index
    %2 = vector.load %arg5[%c0_3, %c0_4] : memref<1x128xf32, #tpu.memory_space<vmem>>, vector<1x128xf32>
    %3 = vector.broadcast %2 : vector<1x128xf32> to vector<16x128xf32>
    %4 = arith.addf %0, %3 : vector<16x128xf32>
    %c0_5 = arith.constant 0 : index
    %c0_6 = arith.constant 0 : index
    %5 = vector.load %arg2[%c0_5, %c0_6] : memref<128x128xf32, #tpu.memory_space<vmem>>, vector<128x128xf32>
    %cst = arith.constant dense<0.000000e+00> : vector<16x128xf32>
    %6 = tpu.matmul %0, %5, %cst {dimension_numbers = #tpu.dot_dimension_numbers<[1], [0], [0], [1], [0, 0, 1, 1], [], []>} : vector<16x128xf32>, vector<128x128xf32>, vector<16x128xf32> -> vector<16x128xf32>
    %7 = vector.broadcast %1 : vector<1x128xf32> to vector<16x128xf32>
    %8 = arith.addf %6, %7 : vector<16x128xf32>
    %cst_7 = arith.constant 5.000000e-01 : f32
    %9 = vector.broadcast %cst_7 : f32 to vector<16x128xf32>
    %10 = arith.mulf %9, %8 : vector<16x128xf32>
    %cst_8 = arith.constant 4.471500e-02 : f32
    %11 = vector.broadcast %cst_8 : f32 to vector<16x128xf32>
    %12 = arith.mulf %11, %8 : vector<16x128xf32>
    %13 = arith.mulf %12, %8 : vector<16x128xf32>
    %14 = arith.mulf %13, %8 : vector<16x128xf32>
    %15 = arith.addf %8, %14 : vector<16x128xf32>
    %cst_9 = arith.constant 0.797884583 : f32
    %16 = vector.broadcast %cst_9 : f32 to vector<16x128xf32>
    %17 = arith.mulf %16, %15 : vector<16x128xf32>
    %18 = math.tanh %17 : vector<16x128xf32>
    %cst_10 = arith.constant 1.000000e+00 : f32
    %19 = vector.broadcast %cst_10 : f32 to vector<16x128xf32>
    %20 = arith.addf %19, %18 : vector<16x128xf32>
    %21 = arith.mulf %10, %20 : vector<16x128xf32>
    %c0_11 = arith.constant 0 : index
    %c0_12 = arith.constant 0 : index
    %22 = vector.load %arg4[%c0_11, %c0_12] : memref<128x128xf32, #tpu.memory_space<vmem>>, vector<128x128xf32>
    %cst_13 = arith.constant dense<0.000000e+00> : vector<16x128xf32>
    %23 = tpu.matmul %21, %22, %cst_13 {dimension_numbers = #tpu.dot_dimension_numbers<[1], [0], [0], [1], [0, 0, 1, 1], [], []>} : vector<16x128xf32>, vector<128x128xf32>, vector<16x128xf32> -> vector<16x128xf32>
    %24 = arith.addf %4, %23 : vector<16x128xf32>
    %c0_14 = arith.constant 0 : index
    %c0_15 = arith.constant 0 : index
    %25 = vector.load %arg6[%c0_14, %c0_15] : memref<16x128xf32, #tpu.memory_space<vmem>>, vector<16x128xf32>
    tpu.vector_store %arg6[%c0_14, %c0_15], %24 {strides = array<i32>} : memref<16x128xf32, #tpu.memory_space<vmem>>, vector<16x128xf32>,
    return
  }
  func.func @transform_0(%arg0: i32) -> (i32, i32) {
    %c0_i32 = arith.constant 0 : i32
    %c0_i32_0 = arith.constant 0 : i32
    return %arg0, %c0_i32 : i32, i32
  }
  func.func @transform_1(%arg0: i32) -> (i32, i32) {
    %c0_i32 = arith.constant 0 : i32
    %c0_i32_0 = arith.constant 0 : i32
    %c0_i32_1 = arith.constant 0 : i32
    return %c0_i32, %c0_i32_0 : i32, i32
  }
  func.func @transform_2(%arg0: i32) -> (i32, i32) {
    %c0_i32 = arith.constant 0 : i32
    %c0_i32_0 = arith.constant 0 : i32
    %c0_i32_1 = arith.constant 0 : i32
    return %c0_i32, %c0_i32_0 : i32, i32
  }
  func.func @transform_3(%arg0: i32) -> (i32, i32) {
    %c0_i32 = arith.constant 0 : i32
    %c0_i32_0 = arith.constant 0 : i32
    %c0_i32_1 = arith.constant 0 : i32
    return %c0_i32, %c0_i32_0 : i32, i32
  }
  func.func @transform_4(%arg0: i32) -> (i32, i32) {
    %c0_i32 = arith.constant 0 : i32
    %c0_i32_0 = arith.constant 0 : i32
    %c0_i32_1 = arith.constant 0 : i32
    return %c0_i32, %c0_i32_0 : i32, i32
  }
  func.func @transform_5(%arg0: i32) -> (i32, i32) {
    %c0_i32 = arith.constant 0 : i32
    %c0_i32_0 = arith.constant 0 : i32
    return %arg0, %c0_i32 : i32, i32
  }
}

</mosaic_0001>

<bundles_post_ra>
// kernel: tpu_custom_call.1
= control target key start
LH: loop header
LB: loop body
LE: loop exit
PB: predicated region body
PF: predicated region fallthrough
CT: control target
= control target key end

     0   :  { %10 = vsyncpa [#allocation3], 0  ;;  %s695_s0 = inlined_call_operand.hbm [shape: f32[16,128], index: 0, kind: input, shape index: {}]   ;;  %s696_s1 = inlined_call_operand.hbm [shape: f32[128,128], index: 1, kind: input, shape index: {}]   ;;  %s697_s2 = inlined_call_operand.vmem [shape: f32[1,128], index: 2, kind: input, shape index: {}]   ;;  %s698_s3 = inlined_call_operand.hbm [shape: f32[128,128], index: 3, kind: input, shape index: {}]   ;;  %s699_s4 = inlined_call_operand.vmem [shape: f32[1,128], index: 4, kind: input, shape index: {}]   ;;  %s700_s5 = inlined_call_operand.hbm [shape: f32[16,128], index: 5, kind: output, shape index: {}]  }
   0x1   :  { %11 = vsyncpa [#allocation6], 0 }
   0x2   :  { %12 = vsyncpa [#allocation4], 0  ;;  %s578_s18 = smov [#allocation5]   ;;  %s579_s20 = smov [#allocation2]  }
   0x3   :  { %s30_s19 = sshll.u32 %s578_s18, 4  ;;  %s18_s21 = sshll.u32 %s579_s20, 4  ;;  %s31_s19 = int_to_ptr.vmem [resolvable:$true] %s30_s19  ;;  %s614_s21 = int_to_ptr.vmem [resolvable:$true] %s18_s21 }
   0x4   :  { %s484_s24 = scalar_lea.hbm %s696_s1, 2048 }
   0x5   :  { %p485_p0 = scmp.ne.s32.totalorder %s696_s1, %s484_s24  ;;  %p488_p1 = scmp.lt.u32.totalorder %s484_s24, %s696_s1 }
   0x7   :  { %p490_p2 = pnand %p488_p1, %p485_p0 }
   0x9   :  { %493 = shalt.err (!%p490_p2)
}
   0xa   :  { %s494_s29 = scalar_lea.vmem %s31_s19, 2048  ;;  %p499_p4 = scmp.lt.s32.totalorder %s31_s19, %s31_s19 }
   0xb   :  { %p495_p3 = scmp.ne.s32.totalorder %s31_s19, %s494_s29  ;;  %p500_p5 = scmp.lt.s32.totalorder %s494_s29, %s494_s29 }
   0xd   :  { %p501_p6 = por %p500_p5, %p499_p4 }
   0xf   :  { %p502_p7 = pnand %p501_p6, %p495_p3 }
  0x11   :  { %505 = shalt.err (!%p502_p7)
}
  0x12   :  { %s580_s30 = smov 128   ;;  %s581_s6 = smov 8  }
  0x13   :  { %36 = dma.hbm_to_vmem [thread:$0]  %s696_s1, 2048, %s31_s19, [#allocation6], %s580_s30, %s580_s30, %s581_s6  }
  0x14   :  { %s506_s11 = scalar_lea.hbm %s695_s0, 256 }
  0x15   :  { %p507_p8 = scmp.ne.s32.totalorder %s695_s0, %s506_s11  ;;  %p510_p9 = scmp.lt.u32.totalorder %s506_s11, %s695_s0 }
  0x17   :  { %p512_p10 = pnand %p510_p9, %p507_p8 }
  0x19   :  { %515 = shalt.err (!%p512_p10)
}
  0x1a   :  { %s516_s16 = scalar_lea.vmem %s614_s21, 256  ;;  %p521_p12 = scmp.lt.s32.totalorder %s614_s21, %s614_s21 }
  0x1b   :  { %p517_p11 = scmp.ne.s32.totalorder %s614_s21, %s516_s16  ;;  %p522_p13 = scmp.lt.s32.totalorder %s516_s16, %s516_s16 }
  0x1d   :  { %p523_p0 = por %p522_p13, %p521_p12 }
  0x1f   :  { %p524_p1 = pnand %p523_p0, %p517_p11 }
  0x21   :  { %527 = shalt.err (!%p524_p1)
}
  0x22   :  { %24 = dma.hbm_to_vmem [thread:$0]  %s695_s0, 256, %s614_s21, [#allocation3], %s580_s30, %s580_s30, %s581_s6  }
  0x23   :  { %s582_s18 = smov [#allocation7]   ;;  %s528_s23 = scalar_lea.hbm %s698_s3, 2048 }
  0x24   :  { %s44_s19 = sshll.u32 %s582_s18, 4  ;;  %p529_p2 = scmp.ne.s32.totalorder %s698_s3, %s528_s23  ;;  %s45_s19 = int_to_ptr.vmem [resolvable:$true] %s44_s19 }
  0x25   :  { %p532_p3 = scmp.lt.u32.totalorder %s528_s23, %s698_s3 }
  0x27   :  { %p534_p4 = pnand %p532_p3, %p529_p2 }
  0x29   :  { %537 = shalt.err (!%p534_p4)
}
  0x2a   :  { %s538_s28 = scalar_lea.vmem %s45_s19, 2048  ;;  %p543_p6 = scmp.lt.s32.totalorder %s45_s19, %s45_s19 }
  0x2b   :  { %p539_p5 = scmp.ne.s32.totalorder %s45_s19, %s538_s28  ;;  %p544_p7 = scmp.lt.s32.totalorder %s538_s28, %s538_s28 }
  0x2d   :  { %p545_p8 = por %p544_p7, %p543_p6 }
  0x2f   :  { %p546_p9 = pnand %p545_p8, %p539_p5 }
  0x31   :  { %549 = shalt.err (!%p546_p9)
}
  0x32   :  { %50 = dma.hbm_to_vmem [thread:$0]  %s698_s3, 2048, %s45_s19, [#allocation6], %s580_s30, %s580_s30, %s581_s6  }
  0x33   :  { %572 = dma.done.wait [#allocation3], 256  }
  0x34   :  { %573 = vsyncadd [#allocation3], 4294967040 }
  0x35   :  { %574 = dma.done.wait [#allocation6], 4096  }
  0x36   :  { %575 = vsyncadd [#allocation6], 4294963200  ;;  %v74_v0 = vld [vmem:[#allocation5] sm:$0xff]  ;;  %v75_v1 = vld [vmem:[#allocation5 + $0x8] sm:$0xff]  ;;  %s583_s8 = smov [#allocation8]  }
  0x37   :  { %v76_v2 = vld [vmem:[#allocation5 + $0x10] sm:$0xff]  ;;  %v410_v3 = vpack.c.bf16 %v75_v1, %v74_v0  ;;  %v77_v4 = vld [vmem:[#allocation5 + $0x18] sm:$0xff]  ;;  %v78_v6 = vld [vmem:[#allocation5 + $0x20] sm:$0xff]  ;;  %s289_s9 = sshll.u32 %s583_s8, 4  ;;  %s290_s9 = int_to_ptr.vmem [resolvable:$true] %s289_s9 }
  0x38   :  { %v414_v5 = vpack.c.bf16 %v77_v4, %v76_v2  ;;  %v79_v7 = vld [vmem:[#allocation5 + $0x28] sm:$0xff]  ;;  %v80_v9 = vld [vmem:[#allocation5 + $0x30] sm:$0xff]  ;;  %v81_v11 = vld [vmem:[#allocation5 + $0x38] sm:$0xff]  ;;  %s550_s10 = scalar_lea.vmem %s290_s9, 256  ;;  %p555_p11 = scmp.lt.s32.totalorder %s290_s9, %s290_s9 }
  0x39   :  { %411 = vmatprep.subr.bf16.mxu0 %v410_v3  ;;  %v418_v8 = vpack.c.bf16 %v79_v7, %v78_v6  ;;  %v666_v10 = vld [vmem:[#allocation2] sm:$0xff]  ;;  %v189_v12 = vld [vmem:[#allocation7] sm:$0xff]  ;;  %v190_v13 = vld [vmem:[#allocation7 + $0x8] sm:$0xff]  ;;  %v422_v15 = vpack.c.bf16 %v81_v11, %v80_v9  ;;  %p551_p10 = scmp.ne.s32.totalorder %s290_s9, %s550_s10  ;;  %p556_p12 = scmp.lt.s32.totalorder %s550_s10, %s550_s10 }
  0x3a   :  { %413 = vmatpush3.bf16.msra.mxu0 %v410_v3  ;;  %372 = vmatprep.mubr.f32.mxu0 %v666_v10  ;;  %v442_v14 = vpack.c.bf16 %v190_v13, %v189_v12  ;;  %v82_v16 = vld [vmem:[#allocation5 + $0x40] sm:$0xff]  ;;  %v83_v17 = vld [vmem:[#allocation5 + $0x48] sm:$0xff]  ;;  %v84_v19 = vld [vmem:[#allocation5 + $0x50] sm:$0xff] }
  0x3b   :  { %415 = vmatprep.subr.bf16.mxu0 %v414_v5  ;;  %v426_v18 = vpack.c.bf16 %v83_v17, %v82_v16  ;;  %v85_v20 = vld [vmem:[#allocation5 + $0x58] sm:$0xff]  ;;  %v86_v22 = vld [vmem:[#allocation5 + $0x60] sm:$0xff]  ;;  %v87_v23 = vld [vmem:[#allocation5 + $0x68] sm:$0xff]  ;;  %p557_p13 = por %p556_p12, %p555_p11 }
  0x3c   :  { %443 = vmatprep.subr.bf16.mxu1 %v442_v14  ;;  %v430_v21 = vpack.c.bf16 %v85_v20, %v84_v19  ;;  %v434_v24 = vpack.c.bf16 %v87_v23, %v86_v22  ;;  %v88_v25 = vld [vmem:[#allocation5 + $0x70] sm:$0xff]  ;;  %v89_v26 = vld [vmem:[#allocation5 + $0x78] sm:$0xff]  ;;  %v193_v32 = vld [vmem:[#allocation7 + $0x20] sm:$0xff] }
  0x3d   :  { %445 = vmatpush3.bf16.msra.mxu1 %v442_v14  ;;  %v438_v27 = vpack.c.bf16 %v89_v26, %v88_v25  ;;  %v669_v28 = vld [vmem:[#allocation2 + $0x8] sm:$0xff]  ;;  %v191_v29 = vld [vmem:[#allocation7 + $0x10] sm:$0xff]  ;;  %v194_v33 = vld [vmem:[#allocation7 + $0x28] sm:$0xff]  ;;  %p558_p0 = pnand %p557_p13, %p551_p10 }
  0x3e   :  { %417 = vmatpush3.bf16.msra.mxu0 %v414_v5  ;;  %v192_v30 = vld [vmem:[#allocation7 + $0x18] sm:$0xff]  ;;  %v450_v34 = vpack.c.bf16 %v194_v33, %v193_v32  ;;  %v195_v35 = vld [vmem:[#allocation7 + $0x30] sm:$0xff]  ;;  %v197_v37 = vld [vmem:[#allocation7 + $0x40] sm:$0xff] }
  0x3f   :  { %419 = vmatprep.subr.bf16.mxu0 %v418_v8  ;;  %v446_v31 = vpack.c.bf16 %v192_v30, %v191_v29  ;;  %v196_v36 = vld [vmem:[#allocation7 + $0x38] sm:$0xff]  ;;  %v198_v39 = vld [vmem:[#allocation7 + $0x48] sm:$0xff]  ;;  %v199_v41 = vld [vmem:[#allocation7 + $0x50] sm:$0xff] }
  0x40   :  { %v454_v38 = vpack.c.bf16 %v196_v36, %v195_v35  ;;  %v458_v40 = vpack.c.bf16 %v198_v39, %v197_v37  ;;  %v200_v42 = vld [vmem:[#allocation7 + $0x58] sm:$0xff]  ;;  %v201_v44 = vld [vmem:[#allocation7 + $0x60] sm:$0xff]  ;;  %v202_v45 = vld [vmem:[#allocation7 + $0x68] sm:$0xff] }
  0x41   :  { %447 = vmatprep.subr.bf16.mxu1 %v446_v31  ;;  %v462_v43 = vpack.c.bf16 %v200_v42, %v199_v41  ;;  %v466_v46 = vpack.c.bf16 %v202_v45, %v201_v44  ;;  %v203_v47 = vld [vmem:[#allocation7 + $0x70] sm:$0xff]  ;;  %v204_v48 = vld [vmem:[#allocation7 + $0x78] sm:$0xff] }
  0x42   :  { %421 = vmatpush3.bf16.msra.mxu0 %v418_v8  ;;  %449 = vmatpush3.bf16.msra.mxu1 %v446_v31  ;;  %v470_v49 = vpack.c.bf16 %v204_v48, %v203_v47  ;;  %v303_v50 = vld [vmem:[%s697_s2] ss:$0 sm:$0xff] }
  0x43   :  { %423 = vmatprep.subr.bf16.mxu0 %v422_v15  ;;  %451 = vmatprep.subr.bf16.mxu1 %v450_v34  ;;  %v302_v9 = vld [vmem:[%s699_s4] ss:$0 sm:$0xff] }
  0x44   :  { %v73_v11 = vadd.f32 %v302_v9, %v669_v28  ;;  %v72_v12 = vadd.f32 %v302_v9, %v666_v10 }
  0x46   :  { %425 = vmatpush3.bf16.msra.mxu0 %v422_v15  ;;  %453 = vmatpush3.bf16.msra.mxu1 %v450_v34 }
  0x47   :  { %427 = vmatprep.subr.bf16.mxu0 %v426_v18  ;;  %455 = vmatprep.subr.bf16.mxu1 %v454_v38 }
  0x4a   :  { %429 = vmatpush3.bf16.msra.mxu0 %v426_v18  ;;  %457 = vmatpush3.bf16.msra.mxu1 %v454_v38 }
  0x4b   :  { %431 = vmatprep.subr.bf16.mxu0 %v430_v21  ;;  %459 = vmatprep.subr.bf16.mxu1 %v458_v40 }
  0x4e   :  { %433 = vmatpush3.bf16.msra.mxu0 %v430_v21  ;;  %461 = vmatpush3.bf16.msra.mxu1 %v458_v40 }
  0x4f   :  { %435 = vmatprep.subr.bf16.mxu0 %v434_v24  ;;  %463 = vmatprep.subr.bf16.mxu1 %v462_v43 }
  0x52   :  { %437 = vmatpush3.bf16.msra.mxu0 %v434_v24  ;;  %465 = vmatpush3.bf16.msra.mxu1 %v462_v43 }
  0x53   :  { %439 = vmatprep.subr.bf16.mxu0 %v438_v27  ;;  %467 = vmatprep.subr.bf16.mxu1 %v466_v46 }
  0x56   :  { %441 = vmatpush3.bf16.msra.mxu0 %v438_v27  ;;  %469 = vmatpush3.bf16.msra.mxu1 %v466_v46 }
  0x57   :  { %471 = vmatprep.subr.bf16.mxu1 %v470_v49 }
  0x59   :  { %373 = vmatmul.mubr.f32.vlgmr.msra.gmra.mrb[0].mxu0 %v669_v28 }
  0x5a   :  { %473 = vmatpush3.bf16.msra.mxu1 %v470_v49 }
 0x12c   :  { %v374_v51 = vpop.f32.mrb[0].mxu0 }
 0x12d   :  { %v168_v52 = vadd.f32 %v374_v51, %v303_v50  ;;  %v162_v53 = vpop.f32.mrb[1].mxu0 }
 0x12e   :  { %v163_v54 = vadd.f32 %v303_v50, %v162_v53 }
 0x12f   :  { %v174_v55 = vmul.f32 0.044715, %v168_v52  ;;  %v172_v6 = vmul.f32 0.5, %v168_v52 }
 0x130   :  { %v173_v56 = vmul.f32 0.044715, %v163_v54  ;;  %v171_v4 = vmul.f32 0.5, %v163_v54 }
 0x131   :  { %v176_v57 = vmul.f32 %v174_v55, %v168_v52 }
 0x132   :  { %v175_v58 = vmul.f32 %v173_v56, %v163_v54 }
 0x133   :  { %v178_v59 = vmul.f32 %v176_v57, %v168_v52 }
 0x134   :  { %v177_v60 = vmul.f32 %v175_v58, %v163_v54 }
 0x135   :  { %v180_v61 = vadd.f32 %v178_v59, %v168_v52 }
 0x136   :  { %v179_v62 = vadd.f32 %v177_v60, %v163_v54 }
 0x137   :  { %v182_v63 = vmul.f32 0.7978846, %v180_v61 }
 0x138   :  { %v181_v0 = vmul.f32 0.7978846, %v179_v62 }
 0x139   :  { %480 = vtanh.f32 %v182_v63 }
 0x13a   :  { %482 = vtanh.f32 %v181_v0 }
 0x143   :  { %v481_v1 = vpop.eup %480 }
 0x144   :  { %v483_v2 = vpop.eup %482  ;;  %v186_v3 = vadd.f32 1.0, %v481_v1 }
 0x145   :  { %v185_v5 = vadd.f32 1.0, %v483_v2 }
 0x146   :  { %v188_v8 = vmul.f32 %v186_v3, %v172_v6 }
 0x147   :  { %v187_v7 = vmul.f32 %v185_v5, %v171_v4 }
 0x149   :  { %407 = vmatprep.mubr.f32.mxu1 %v187_v7 }
 0x14a   :  { %408 = vmatmul.mubr.f32.vlgmr.msra.gmra.mrb[0].mxu1 %v188_v8 }
 0x21d   :  { %v409_v13 = vpop.f32.mrb[0].mxu1 }
 0x21e   :  { %v281_v14 = vadd.f32 %v409_v13, %v73_v11  ;;  %v271_v15 = vpop.f32.mrb[1].mxu1 }
 0x21f   :  { %v280_v16 = vadd.f32 %v271_v15, %v72_v12 }
 0x220   :  { %283 = vst [vmem:[#allocation8 + $0x8] sm:$0xff] %v281_v14 }
 0x221   :  { %282 = vst [vmem:[#allocation8] sm:$0xff] %v280_v16 }
 0x222   :  { %561 = shalt.err (!%p558_p0)
}
 0x223   :  { %s562_s12 = scalar_lea.hbm %s700_s5, 256 }
 0x224   :  { %p563_p1 = scmp.ne.s32.totalorder %s700_s5, %s562_s12  ;;  %p566_p2 = scmp.lt.u32.totalorder %s562_s12, %s700_s5 }
 0x226   :  { %p568_p3 = pnand %p566_p2, %p563_p1 }
 0x228   :  { %571 = shalt.err (!%p568_p3)
}
 0x229   :  { %295 = dma.vmem_to_hbm [thread:$0]  %s290_s9, 256, %s700_s5, [#allocation4], %s580_s30, %s580_s30, %s581_s6  }
 0x22a   :  { %576 = dma.done.wait [#allocation4], 256  }
 0x22b   :  { %577 = vsyncadd [#allocation4], 4294967040 }
 0x22c   :  { %299 = vsyncpa [#allocation3], 1 }
 0x22d   :  { %300 = vsyncpa [#allocation6], 1 }
 0x22e   :  { %301 = vsyncpa [#allocation4], 1 }

// kernel: tpu_custom_call.1
= control target key start
LH: loop header
LB: loop body
LE: loop exit
PB: predicated region body
PF: predicated region fallthrough
CT: control target
= control target key end

     0   :  { %10 = vsyncpa [#allocation3], 0  ;;  %s695_s0 = inlined_call_operand.hbm [shape: f32[16,128], index: 0, kind: input, shape index: {}]   ;;  %s696_s1 = inlined_call_operand.hbm [shape: f32[128,128], index: 1, kind: input, shape index: {}]   ;;  %s697_s2 = inlined_call_operand.vmem [shape: f32[1,128], index: 2, kind: input, shape index: {}]   ;;  %s698_s3 = inlined_call_operand.hbm [shape: f32[128,128], index: 3, kind: input, shape index: {}]   ;;  %s699_s4 = inlined_call_operand.vmem [shape: f32[1,128], index: 4, kind: input, shape index: {}]   ;;  %s700_s5 = inlined_call_operand.hbm [shape: f32[16,128], index: 5, kind: output, shape index: {}]  }
   0x1   :  { %11 = vsyncpa [#allocation6], 0 }
   0x2   :  { %12 = vsyncpa [#allocation4], 0  ;;  %s578_s18 = smov [#allocation5]   ;;  %s579_s20 = smov [#allocation2]  }
   0x3   :  { %s30_s19 = sshll.u32 %s578_s18, 4  ;;  %s18_s21 = sshll.u32 %s579_s20, 4  ;;  %s31_s19 = int_to_ptr.vmem [resolvable:$true] %s30_s19  ;;  %s614_s21 = int_to_ptr.vmem [resolvable:$true] %s18_s21 }
   0x4   :  { %s484_s24 = scalar_lea.hbm %s696_s1, 2048 }
   0x5   :  { %p485_p0 = scmp.ne.s32.totalorder %s696_s1, %s484_s24  ;;  %p488_p1 = scmp.lt.u32.totalorder %s484_s24, %s696_s1 }
   0x7   :  { %p490_p2 = pnand %p488_p1, %p485_p0 }
   0x9   :  { %493 = shalt.err (!%p490_p2)
}
   0xa   :  { %s494_s29 = scalar_lea.vmem %s31_s19, 2048  ;;  %p499_p4 = scmp.lt.s32.totalorder %s31_s19, %s31_s19 }
   0xb   :  { %p495_p3 = scmp.ne.s32.totalorder %s31_s19, %s494_s29  ;;  %p500_p5 = scmp.lt.s32.totalorder %s494_s29, %s494_s29 }
   0xd   :  { %p501_p6 = por %p500_p5, %p499_p4 }
   0xf   :  { %p502_p7 = pnand %p501_p6, %p495_p3 }
  0x11   :  { %505 = shalt.err (!%p502_p7)
}
  0x12   :  { %s580_s30 = smov 128   ;;  %s581_s6 = smov 8  }
  0x13   :  { %36 = dma.hbm_to_vmem [thread:$0]  %s696_s1, 2048, %s31_s19, [#allocation6], %s580_s30, %s580_s30, %s581_s6  }
  0x14   :  { %s506_s11 = scalar_lea.hbm %s695_s0, 256 }
  0x15   :  { %p507_p8 = scmp.ne.s32.totalorder %s695_s0, %s506_s11  ;;  %p510_p9 = scmp.lt.u32.totalorder %s506_s11, %s695_s0 }
  0x17   :  { %p512_p10 = pnand %p510_p9, %p507_p8 }
  0x19   :  { %515 = shalt.err (!%p512_p10)
}
  0x1a   :  { %s516_s16 = scalar_lea.vmem %s614_s21, 256  ;;  %p521_p12 = scmp.lt.s32.totalorder %s614_s21, %s614_s21 }
  0x1b   :  { %p517_p11 = scmp.ne.s32.totalorder %s614_s21, %s516_s16  ;;  %p522_p13 = scmp.lt.s32.totalorder %s516_s16, %s516_s16 }
  0x1d   :  { %p523_p0 = por %p522_p13, %p521_p12 }
  0x1f   :  { %p524_p1 = pnand %p523_p0, %p517_p11 }
  0x21   :  { %527 = shalt.err (!%p524_p1)
}
  0x22   :  { %24 = dma.hbm_to_vmem [thread:$0]  %s695_s0, 256, %s614_s21, [#allocation3], %s580_s30, %s580_s30, %s581_s6  }
  0x23   :  { %s582_s18 = smov [#allocation7]   ;;  %s528_s23 = scalar_lea.hbm %s698_s3, 2048 }
  0x24   :  { %s44_s19 = sshll.u32 %s582_s18, 4  ;;  %p529_p2 = scmp.ne.s32.totalorder %s698_s3, %s528_s23  ;;  %s45_s19 = int_to_ptr.vmem [resolvable:$true] %s44_s19 }
  0x25   :  { %p532_p3 = scmp.lt.u32.totalorder %s528_s23, %s698_s3 }
  0x27   :  { %p534_p4 = pnand %p532_p3, %p529_p2 }
  0x29   :  { %537 = shalt.err (!%p534_p4)
}
  0x2a   :  { %s538_s28 = scalar_lea.vmem %s45_s19, 2048  ;;  %p543_p6 = scmp.lt.s32.totalorder %s45_s19, %s45_s19 }
  0x2b   :  { %p539_p5 = scmp.ne.s32.totalorder %s45_s19, %s538_s28  ;;  %p544_p7 = scmp.lt.s32.totalorder %s538_s28, %s538_s28 }
  0x2d   :  { %p545_p8 = por %p544_p7, %p543_p6 }
  0x2f   :  { %p546_p9 = pnand %p545_p8, %p539_p5 }
  0x31   :  { %549 = shalt.err (!%p546_p9)
}
  0x32   :  { %50 = dma.hbm_to_vmem [thread:$0]  %s698_s3, 2048, %s45_s19, [#allocation6], %s580_s30, %s580_s30, %s581_s6  }
  0x33   :  { %572 = dma.done.wait [#allocation3], 256  }
  0x34   :  { %573 = vsyncadd [#allocation3], 4294967040 }
  0x35   :  { %574 = dma.done.wait [#allocation6], 4096  }
  0x36   :  { %575 = vsyncadd [#allocation6], 4294963200  ;;  %v74_v0 = vld [vmem:[#allocation5] sm:$0xff]  ;;  %v75_v1 = vld [vmem:[#allocation5 + $0x8] sm:$0xff]  ;;  %s583_s8 = smov [#allocation8]  }
  0x37   :  { %v76_v2 = vld [vmem:[#allocation5 + $0x10] sm:$0xff]  ;;  %v410_v3 = vpack.c.bf16 %v75_v1, %v74_v0  ;;  %v77_v4 = vld [vmem:[#allocation5 + $0x18] sm:$0xff]  ;;  %v78_v6 = vld [vmem:[#allocation5 + $0x20] sm:$0xff]  ;;  %s289_s9 = sshll.u32 %s583_s8, 4  ;;  %s290_s9 = int_to_ptr.vmem [resolvable:$true] %s289_s9 }
  0x38   :  { %v414_v5 = vpack.c.bf16 %v77_v4, %v76_v2  ;;  %v79_v7 = vld [vmem:[#allocation5 + $0x28] sm:$0xff]  ;;  %v80_v9 = vld [vmem:[#allocation5 + $0x30] sm:$0xff]  ;;  %v81_v11 = vld [vmem:[#allocation5 + $0x38] sm:$0xff]  ;;  %s550_s10 = scalar_lea.vmem %s290_s9, 256  ;;  %p555_p11 = scmp.lt.s32.totalorder %s290_s9, %s290_s9 }
  0x39   :  { %411 = vmatprep.subr.bf16.mxu0 %v410_v3  ;;  %v418_v8 = vpack.c.bf16 %v79_v7, %v78_v6  ;;  %v666_v10 = vld [vmem:[#allocation2] sm:$0xff]  ;;  %v189_v12 = vld [vmem:[#allocation7] sm:$0xff]  ;;  %v190_v13 = vld [vmem:[#allocation7 + $0x8] sm:$0xff]  ;;  %v422_v15 = vpack.c.bf16 %v81_v11, %v80_v9  ;;  %p551_p10 = scmp.ne.s32.totalorder %s290_s9, %s550_s10  ;;  %p556_p12 = scmp.lt.s32.totalorder %s550_s10, %s550_s10 }
  0x3a   :  { %413 = vmatpush3.bf16.msra.mxu0 %v410_v3  ;;  %372 = vmatprep.mubr.f32.mxu0 %v666_v10  ;;  %v442_v14 = vpack.c.bf16 %v190_v13, %v189_v12  ;;  %v82_v16 = vld [vmem:[#allocation5 + $0x40] sm:$0xff]  ;;  %v83_v17 = vld [vmem:[#allocation5 + $0x48] sm:$0xff]  ;;  %v84_v19 = vld [vmem:[#allocation5 + $0x50] sm:$0xff] }
  0x3b   :  { %415 = vmatprep.subr.bf16.mxu0 %v414_v5  ;;  %v426_v18 = vpack.c.bf16 %v83_v17, %v82_v16  ;;  %v85_v20 = vld [vmem:[#allocation5 + $0x58] sm:$0xff]  ;;  %v86_v22 = vld [vmem:[#allocation5 + $0x60] sm:$0xff]  ;;  %v87_v23 = vld [vmem:[#allocation5 + $0x68] sm:$0xff]  ;;  %p557_p13 = por %p556_p12, %p555_p11 }
  0x3c   :  { %443 = vmatprep.subr.bf16.mxu1 %v442_v14  ;;  %v430_v21 = vpack.c.bf16 %v85_v20, %v84_v19  ;;  %v434_v24 = vpack.c.bf16 %v87_v23, %v86_v22  ;;  %v88_v25 = vld [vmem:[#allocation5 + $0x70] sm:$0xff]  ;;  %v89_v26 = vld [vmem:[#allocation5 + $0x78] sm:$0xff]  ;;  %v193_v32 = vld [vmem:[#allocation7 + $0x20] sm:$0xff] }
  0x3d   :  { %445 = vmatpush3.bf16.msra.mxu1 %v442_v14  ;;  %v438_v27 = vpack.c.bf16 %v89_v26, %v88_v25  ;;  %v669_v28 = vld [vmem:[#allocation2 + $0x8] sm:$0xff]  ;;  %v191_v29 = vld [vmem:[#allocation7 + $0x10] sm:$0xff]  ;;  %v194_v33 = vld [vmem:[#allocation7 + $0x28] sm:$0xff]  ;;  %p558_p0 = pnand %p557_p13, %p551_p10 }
  0x3e   :  { %417 = vmatpush3.bf16.msra.mxu0 %v414_v5  ;;  %v192_v30 = vld [vmem:[#allocation7 + $0x18] sm:$0xff]  ;;  %v450_v34 = vpack.c.bf16 %v194_v33, %v193_v32  ;;  %v195_v35 = vld [vmem:[#allocation7 + $0x30] sm:$0xff]  ;;  %v197_v37 = vld [vmem:[#allocation7 + $0x40] sm:$0xff] }
  0x3f   :  { %419 = vmatprep.subr.bf16.mxu0 %v418_v8  ;;  %v446_v31 = vpack.c.bf16 %v192_v30, %v191_v29  ;;  %v196_v36 = vld [vmem:[#allocation7 + $0x38] sm:$0xff]  ;;  %v198_v39 = vld [vmem:[#allocation7 + $0x48] sm:$0xff]  ;;  %v199_v41 = vld [vmem:[#allocation7 + $0x50] sm:$0xff] }
  0x40   :  { %v454_v38 = vpack.c.bf16 %v196_v36, %v195_v35  ;;  %v458_v40 = vpack.c.bf16 %v198_v39, %v197_v37  ;;  %v200_v42 = vld [vmem:[#allocation7 + $0x58] sm:$0xff]  ;;  %v201_v44 = vld [vmem:[#allocation7 + $0x60] sm:$0xff]  ;;  %v202_v45 = vld [vmem:[#allocation7 + $0x68] sm:$0xff] }
  0x41   :  { %447 = vmatprep.subr.bf16.mxu1 %v446_v31  ;;  %v462_v43 = vpack.c.bf16 %v200_v42, %v199_v41  ;;  %v466_v46 = vpack.c.bf16 %v202_v45, %v201_v44  ;;  %v203_v47 = vld [vmem:[#allocation7 + $0x70] sm:$0xff]  ;;  %v204_v48 = vld [vmem:[#allocation7 + $0x78] sm:$0xff] }
  0x42   :  { %421 = vmatpush3.bf16.msra.mxu0 %v418_v8  ;;  %449 = vmatpush3.bf16.msra.mxu1 %v446_v31  ;;  %v470_v49 = vpack.c.bf16 %v204_v48, %v203_v47  ;;  %v303_v50 = vld [vmem:[%s697_s2] ss:$0 sm:$0xff] }
  0x43   :  { %423 = vmatprep.subr.bf16.mxu0 %v422_v15  ;;  %451 = vmatprep.subr.bf16.mxu1 %v450_v34  ;;  %v302_v9 = vld [vmem:[%s699_s4] ss:$0 sm:$0xff] }
  0x44   :  { %v73_v11 = vadd.f32 %v302_v9, %v669_v28  ;;  %v72_v12 = vadd.f32 %v302_v9, %v666_v10 }
  0x46   :  { %425 = vmatpush3.bf16.msra.mxu0 %v422_v15  ;;  %453 = vmatpush3.bf16.msra.mxu1 %v450_v34 }
  0x47   :  { %427 = vmatprep.subr.bf16.mxu0 %v426_v18  ;;  %455 = vmatprep.subr.bf16.mxu1 %v454_v38 }
  0x4a   :  { %429 = vmatpush3.bf16.msra.mxu0 %v426_v18  ;;  %457 = vmatpush3.bf16.msra.mxu1 %v454_v38 }
  0x4b   :  { %431 = vmatprep.subr.bf16.mxu0 %v430_v21  ;;  %459 = vmatprep.subr.bf16.mxu1 %v458_v40 }
  0x4e   :  { %433 = vmatpush3.bf16.msra.mxu0 %v430_v21  ;;  %461 = vmatpush3.bf16.msra.mxu1 %v458_v40 }
  0x4f   :  { %435 = vmatprep.subr.bf16.mxu0 %v434_v24  ;;  %463 = vmatprep.subr.bf16.mxu1 %v462_v43 }
  0x52   :  { %437 = vmatpush3.bf16.msra.mxu0 %v434_v24  ;;  %465 = vmatpush3.bf16.msra.mxu1 %v462_v43 }
  0x53   :  { %439 = vmatprep.subr.bf16.mxu0 %v438_v27  ;;  %467 = vmatprep.subr.bf16.mxu1 %v466_v46 }
  0x56   :  { %441 = vmatpush3.bf16.msra.mxu0 %v438_v27  ;;  %469 = vmatpush3.bf16.msra.mxu1 %v466_v46 }
  0x57   :  { %471 = vmatprep.subr.bf16.mxu1 %v470_v49 }
  0x59   :  { %373 = vmatmul.mubr.f32.vlgmr.msra.gmra.mrb[0].mxu0 %v669_v28 }
  0x5a   :  { %473 = vmatpush3.bf16.msra.mxu1 %v470_v49 }
 0x12c   :  { %v374_v51 = vpop.f32.mrb[0].mxu0 }
 0x12d   :  { %v168_v52 = vadd.f32 %v374_v51, %v303_v50  ;;  %v162_v53 = vpop.f32.mrb[1].mxu0 }
 0x12e   :  { %v163_v54 = vadd.f32 %v303_v50, %v162_v53 }
 0x12f   :  { %v174_v55 = vmul.f32 0.044715, %v168_v52  ;;  %v172_v6 = vmul.f32 0.5, %v168_v52 }
 0x130   :  { %v173_v56 = vmul.f32 0.044715, %v163_v54  ;;  %v171_v4 = vmul.f32 0.5, %v163_v54 }
 0x131   :  { %v176_v57 = vmul.f32 %v174_v55, %v168_v52 }
 0x132   :  { %v175_v58 = vmul.f32 %v173_v56, %v163_v54 }
 0x133   :  { %v178_v59 = vmul.f32 %v176_v57, %v168_v52 }
 0x134   :  { %v177_v60 = vmul.f32 %v175_v58, %v163_v54 }
 0x135   :  { %v180_v61 = vadd.f32 %v178_v59, %v168_v52 }
 0x136   :  { %v179_v62 = vadd.f32 %v177_v60, %v163_v54 }
 0x137   :  { %v182_v63 = vmul.f32 0.7978846, %v180_v61 }
 0x138   :  { %v181_v0 = vmul.f32 0.7978846, %v179_v62 }
 0x139   :  { %480 = vtanh.f32 %v182_v63 }
 0x13a   :  { %482 = vtanh.f32 %v181_v0 }
 0x143   :  { %v481_v1 = vpop.eup %480 }
 0x144   :  { %v483_v2 = vpop.eup %482  ;;  %v186_v3 = vadd.f32 1.0, %v481_v1 }
 0x145   :  { %v185_v5 = vadd.f32 1.0, %v483_v2 }
 0x146   :  { %v188_v8 = vmul.f32 %v186_v3, %v172_v6 }
 0x147   :  { %v187_v7 = vmul.f32 %v185_v5, %v171_v4 }
 0x149   :  { %407 = vmatprep.mubr.f32.mxu1 %v187_v7 }
 0x14a   :  { %408 = vmatmul.mubr.f32.vlgmr.msra.gmra.mrb[0].mxu1 %v188_v8 }
 0x21d   :  { %v409_v13 = vpop.f32.mrb[0].mxu1 }
 0x21e   :  { %v281_v14 = vadd.f32 %v409_v13, %v73_v11  ;;  %v271_v15 = vpop.f32.mrb[1].mxu1 }
 0x21f   :  { %v280_v16 = vadd.f32 %v271_v15, %v72_v12 }
 0x220   :  { %283 = vst [vmem:[#allocation8 + $0x8] sm:$0xff] %v281_v14 }
 0x221   :  { %282 = vst [vmem:[#allocation8] sm:$0xff] %v280_v16 }
 0x222   :  { %561 = shalt.err (!%p558_p0)
}
 0x223   :  { %s562_s12 = scalar_lea.hbm %s700_s5, 256 }
 0x224   :  { %p563_p1 = scmp.ne.s32.totalorder %s700_s5, %s562_s12  ;;  %p566_p2 = scmp.lt.u32.totalorder %s562_s12, %s700_s5 }
 0x226   :  { %p568_p3 = pnand %p566_p2, %p563_p1 }
 0x228   :  { %571 = shalt.err (!%p568_p3)
}
 0x229   :  { %295 = dma.vmem_to_hbm [thread:$0]  %s290_s9, 256, %s700_s5, [#allocation4], %s580_s30, %s580_s30, %s581_s6  }
 0x22a   :  { %576 = dma.done.wait [#allocation4], 256  }
 0x22b   :  { %577 = vsyncadd [#allocation4], 4294967040 }
 0x22c   :  { %299 = vsyncpa [#allocation3], 1 }
 0x22d   :  { %300 = vsyncpa [#allocation6], 1 }
 0x22e   :  { %301 = vsyncpa [#allocation4], 1 }

</bundles_post_ra>
